<compile_context>
chip_gen: v7x
topology: tpu7x:2x2x1
jax: 0.10.0
libtpu: 0.0.40
codegen_flags: <defaults>
</compile_context>

<pallas_src>
import math

import jax
import jax.numpy as jnp
import numpy as np
from jax import lax
from jax.experimental import pallas as pl
from jax.experimental.pallas import tpu as pltpu


def _normalize2mom_const_silu() -> float:
    """1 / sqrt(E_{z~N(0,1)}[silu(z)^2]) -- host-side numpy quadrature, once."""
    z = np.linspace(-12.0, 12.0, 200001, dtype=np.float64)
    phi = np.exp(-0.5 * z * z) / np.sqrt(2.0 * np.pi)
    silu = z / (1.0 + np.exp(-z))
    y = silu * silu * phi
    dz = z[1] - z[0]
    second_moment = float(np.sum((y[1:] + y[:-1]) * 0.5 * dz))
    return float(1.0 / math.sqrt(second_moment))


_ACT_CONST = _normalize2mom_const_silu()   # ~1.679


def _round_up(n: int, m: int) -> int:
    return ((n + m - 1) // m) * m


def _readout_kernel(x_ref, w1t_ref, w2_ref, o_ref):
    # x_ref  : [TILE_N, C_in]  natural layout, producer dtype (bf16/f32)
    # w1t_ref: [H, C_in]       pre-scaled by 1/sqrt(C_in), same dtype as x
    # w2_ref : [H, 1]  f32     pre-scaled by act_const/sqrt(H)
    # o_ref  : [1, TILE_N] f32 lane-dense output block
    #
    # Contract C_in of w1^T against C_in of x -> [H, TILE_N]: nodes end up on the
    # lane axis without any HBM-side transpose; f32 MXU accumulation.
    h = lax.dot_general(
        w1t_ref[...], x_ref[...],
        dimension_numbers=(((1,), (1,)), ((), ())),
        preferred_element_type=jnp.float32,
    )                                                    # [H, TILE_N]
    h = h * jax.nn.sigmoid(h)                            # SiLU in f32 (VPU + EUP)
    # H -> 1 contraction: VPU multiply + sublane reduce (XLU); scale constants are
    # already folded into w2, so this is the final answer.
    o_ref[...] = jnp.sum(h * w2_ref[...], axis=0,
                         keepdims=True).astype(o_ref.dtype)   # [1, TILE_N]


def _choose_tile_n(n: int, requested: int) -> int:
    # Lane-aligned, large enough to amortize the ~0.35 us per-step overhead,
    # small enough to keep double-buffered x + f32 intermediates inside 32 MiB
    # scoped VMEM on every generation (cap 16384 cols), and with >=2 grid steps
    # when possible so v7x's two TensorCores both get work.
    t = max(128, min(int(requested), 16384))
    t = _round_up(t, 128)
    t = min(t, _round_up(n, 128))           # never bigger than the node count
    if n > 128:
        t = min(t, _round_up((n + 1) // 2, 128))   # >= 2 grid steps (v7x megacore)
    return max(t, 128)


def nonlinear_readout(x: jax.Array, w1: jax.Array, w2: jax.Array,
                      *, tile_n: int = 8192) -> jax.Array:
    """x: [N, C_in] (any float dtype), w1: [C_in, H], w2: [H, 1]  ->  [N, 1] f32."""
    N, C_in = x.shape
    C_in_w, H = w1.shape
    assert C_in == C_in_w and w2.shape == (H, 1)

    # Stream x exactly as given (no transpose / pad / cast passes over HBM).
    stream_dt = x.dtype if x.dtype in (jnp.bfloat16, jnp.float16, jnp.float32) \
        else jnp.float32

    # Fold e3nn path-normalization + normalize2mom constants into the tiny,
    # grid-resident weights once on the host side.
    c1 = 1.0 / math.sqrt(C_in)
    c2 = 1.0 / math.sqrt(H)
    w1t = (w1.astype(jnp.float32).T * c1).astype(stream_dt)        # [H, C_in]
    w2s = (w2.astype(jnp.float32) * (c2 * _ACT_CONST))             # [H, 1] f32

    tn = _choose_tile_n(N, tile_n)
    grid = (pl.cdiv(N, tn),)          # ragged last block handled by Pallas

    x_bytes = N * C_in * np.dtype(stream_dt).itemsize
    w_bytes = C_in * H * np.dtype(stream_dt).itemsize + H * 4
    out_bytes = N * 4

    out = pl.pallas_call(
        _readout_kernel,
        out_shape=jax.ShapeDtypeStruct((1, N), jnp.float32),
        grid_spec=pltpu.PrefetchScalarGridSpec(
            num_scalar_prefetch=0,
            grid=grid,
            in_specs=[
                pl.BlockSpec((tn, C_in), lambda i: (i, 0)),   # x row-tile (natural layout)
                pl.BlockSpec((H, C_in), lambda i: (0, 0)),    # w1^T (resident)
                pl.BlockSpec((H, 1), lambda i: (0, 0)),       # w2   (resident)
            ],
            out_specs=pl.BlockSpec((1, tn), lambda i: (0, i)),   # lane-dense output
        ),
        compiler_params=pltpu.CompilerParams(
            # independent per-node tiles: shard across v7x's two TensorCores
            dimension_semantics=("parallel",),
            # >= v5e's 16 MiB scoped default, == v6e/v7x default, < v7x physical
            vmem_limit_bytes=32 * 1024 * 1024,
        ),
        cost_estimate=pl.CostEstimate(
            flops=2 * N * C_in * H + 4 * N * H,
            transcendentals=N * H,
            bytes_accessed=x_bytes + w_bytes + out_bytes,
        ),
    )(x, w1t, w2s)

    return out.reshape(N, 1)


def reference(x, w1, w2):
    """Full-f32 reference for the same folded-constant formulation."""
    c1 = 1.0 / math.sqrt(x.shape[1])
    c2 = 1.0 / math.sqrt(w1.shape[1])
    h = (x.astype(jnp.float32) @ w1.astype(jnp.float32)) * c1
    h = _ACT_CONST * (h * jax.nn.sigmoid(h))
    return ((h @ w2.astype(jnp.float32)) * c2).astype(jnp.float32)


if __name__ == "__main__":
    # irreps_in = "64x0e", MLP_irreps = "32x0e", output irreps = "0e"
    N, C_IN, H = 512, 64, 32

    key = jax.random.PRNGKey(0)
    kx, kw1, kw2 = jax.random.split(key, 3)

    # Producer emits bf16 node features (MXU-native) -> kernel streams them
    # directly; no wrapper-side cast/transpose/pad passes over HBM.
    x = jax.random.normal(kx, (N, C_IN), dtype=jnp.float32).astype(jnp.bfloat16)
    # e3nn o3.Linear weights ~ N(0, 1); path normalization applied at forward.
    w1 = jax.random.normal(kw1, (C_IN, H), dtype=jnp.float32)
    w2 = jax.random.normal(kw2, (H, 1), dtype=jnp.float32)

    # Default tile_n clamps to 256 here -> a 2-step (pipelined, megacore-splittable) grid.
    out = jax.block_until_ready(nonlinear_readout(x, w1, w2))

    ref = reference(x, w1, w2)
    assert out.shape == (N, 1)
    # bf16 streaming of x / w1 with f32 accumulation -> slightly looser tolerance
    # than exact-f32 parity.
    assert jnp.allclose(out, ref, atol=3e-2, rtol=3e-2), "mismatch vs reference"

    print("KERNEL_OK")
</pallas_src>

<mosaic_0001>
module attributes {stable_mosaic.version = 11 : i64} {
  func.func @_readout_kernel(%arg0: i32, %arg1: memref<256x64xbf16, #tpu.memory_space<vmem>>, %arg2: memref<32x64xbf16, #tpu.memory_space<vmem>>, %arg3: memref<32x1xf32, #tpu.memory_space<vmem>>, %arg4: memref<1x256xf32, #tpu.memory_space<vmem>>) attributes {dimension_semantics = [#tpu.dimension_semantics<parallel>], iteration_bounds = array<i64: 2>, scalar_prefetch = 0 : i64, scratch_operands = 0 : i64, tpu.core_type = #tpu.core_type<tc>, window_params = [{transform_indices = @transform_0, window_bounds = array<i64: 256, 64>}, {pipeline_mode = #tpu.pipeline_mode<synchronous>, transform_indices = @transform_1, window_bounds = array<i64: 32, 64>}, {pipeline_mode = #tpu.pipeline_mode<synchronous>, transform_indices = @transform_2, window_bounds = array<i64: 32, 1>}, {transform_indices = @transform_3, window_bounds = array<i64: 1, 256>}]} {
    %c0 = arith.constant 0 : index
    %c0_0 = arith.constant 0 : index
    %0 = vector.load %arg2[%c0, %c0_0] : memref<32x64xbf16, #tpu.memory_space<vmem>>, vector<32x64xbf16>
    %c0_1 = arith.constant 0 : index
    %c0_2 = arith.constant 0 : index
    %1 = vector.load %arg1[%c0_1, %c0_2] : memref<256x64xbf16, #tpu.memory_space<vmem>>, vector<256x64xbf16>
    %cst = arith.constant dense<0.000000e+00> : vector<32x256xf32>
    %2 = tpu.matmul %0, %1, %cst {dimension_numbers = #tpu.dot_dimension_numbers<[1], [1], [0], [0], [0, 0, 1, 0], [], []>} : vector<32x64xbf16>, vector<256x64xbf16>, vector<32x256xf32> -> vector<32x256xf32>
    %3 = arith.negf %2 : vector<32x256xf32>
    %4 = math.exp %3 : vector<32x256xf32>
    %cst_3 = arith.constant 1.000000e+00 : f32
    %5 = vector.broadcast %cst_3 : f32 to vector<32x256xf32>
    %6 = arith.addf %5, %4 : vector<32x256xf32>
    %7 = arith.divf %5, %6 : vector<32x256xf32>
    %8 = arith.mulf %2, %7 : vector<32x256xf32>
    %c0_4 = arith.constant 0 : index
    %c0_5 = arith.constant 0 : index
    %9 = vector.load %arg3[%c0_4, %c0_5] : memref<32x1xf32, #tpu.memory_space<vmem>>, vector<32x1xf32>
    %10 = vector.broadcast %9 : vector<32x1xf32> to vector<32x256xf32>
    %11 = arith.mulf %8, %10 : vector<32x256xf32>
    %cst_6 = arith.constant dense<0.000000e+00> : vector<256xf32>
    %12 = vector.multi_reduction <add>, %11, %cst_6 [0] : vector<32x256xf32> to vector<256xf32>
    %13 = vector.shape_cast %12 : vector<256xf32> to vector<1x256xf32>
    %c0_7 = arith.constant 0 : index
    %c0_8 = arith.constant 0 : index
    %14 = vector.load %arg4[%c0_7, %c0_8] : memref<1x256xf32, #tpu.memory_space<vmem>>, vector<1x256xf32>
    tpu.vector_store %arg4[%c0_7, %c0_8], %13 {strides = array<i32>} : memref<1x256xf32, #tpu.memory_space<vmem>>, vector<1x256xf32>,
    return
  }
  func.func @transform_0(%arg0: i32) -> (i32, i32) {
    %c0_i32 = arith.constant 0 : i32
    %c0_i32_0 = arith.constant 0 : i32
    return %arg0, %c0_i32 : i32, i32
  }
  func.func @transform_1(%arg0: i32) -> (i32, i32) {
    %c0_i32 = arith.constant 0 : i32
    %c0_i32_0 = arith.constant 0 : i32
    %c0_i32_1 = arith.constant 0 : i32
    return %c0_i32, %c0_i32_0 : i32, i32
  }
  func.func @transform_2(%arg0: i32) -> (i32, i32) {
    %c0_i32 = arith.constant 0 : i32
    %c0_i32_0 = arith.constant 0 : i32
    %c0_i32_1 = arith.constant 0 : i32
    return %c0_i32, %c0_i32_0 : i32, i32
  }
  func.func @transform_3(%arg0: i32) -> (i32, i32) {
    %c0_i32 = arith.constant 0 : i32
    %c0_i32_0 = arith.constant 0 : i32
    return %c0_i32, %arg0 : i32, i32
  }
}

</mosaic_0001>

<bundles_post_ra>
// kernel: tpu_custom_call.1
= control target key start
LH: loop header
LB: loop body
LE: loop exit
PB: predicated region body
PF: predicated region fallthrough
CT: control target
= control target key end

     0   :  { %8 = vsyncpa [#allocation3], 0  ;;  %s1054_s0 = inlined_call_operand.vmem [shape: bf16[512,64], index: 0, kind: input, shape index: {}]   ;;  %s1055_s1 = inlined_call_operand.vmem [shape: bf16[32,64], index: 1, kind: input, shape index: {}]   ;;  %s1056_s2 = inlined_call_operand.vmem [shape: f32[32,1], index: 2, kind: input, shape index: {}]   ;;  %s1057_s3 = inlined_call_operand.hbm [shape: f32[1,512], index: 3, kind: output, shape index: {}]  }
   0x1   :  { %10 = vsyncpa [#allocation3 + $0x1], 0  ;;  %s883_s12 = smov 0   ;;  %s885_s13 = smov 0  }
   0x2   :  { %s887_s14 = smov 0   ;;  %s889_s15 = smov 0  }
   0x3 LB: > { %s609_s16 = sadd.s32 4294967295, %s858_s15   ;;  %s610_s17 = sadd.s32 4294967294, %s858_s15   ;;  %s858_s15 = sphi %s889_s15, %s1063_s15   ;;  %s854_s14 = sphi %s887_s14, %s1062_s14   ;;  %s850_s13 = sphi %s885_s13, %s1061_s13   ;;  %s846_s12 = sphi %s883_s12, %s1060_s12  }
   0x4   : > { %s906_s18 = sadd.s32 1, %s858_s15   ;;  %s91_s19 = sadd.s32 1, %s854_s14 }
   0x5   : > { %s88_s20 = ssub.s32 %s858_s15, %s906_s18  ;;  %p101_p0 = scmp.ne.s32.totalorder %s854_s14, %s850_s13 }
   0x6   : > { %p89_p1 = scmp.eq.s32.totalorder %s88_s20, 0  ;;  %p102_p2 = scmp.eq.s32.totalorder %s609_s16, 1 }
   0x7   : > { %p107_p3 = scmp.ne.s32.totalorder %s850_s13, %s846_s12  ;;  %p108_p4 = scmp.eq.s32.totalorder %s610_s17, 1 }
   0x8   : > { %s916_s21 = scalar_select %p89_p1, %s854_s14, %s91_s19  }
   0x9   : > { %p918_p5 = por %p102_p2, %p101_p0  ;;  %p922_p6 = por %p108_p4, %p107_p3 }
   0xa   : > { %p613_p7 = scmp.ge.s32.totalorder %s858_s15, 1  ;;  %p141_p8 = scmp.lt.s32.totalorder %s858_s15, 3 }
   0xc   : > { %p142_p9 = pnand %p613_p7, %p141_p8 }
   0xd   : > { %s928_s24 = sshll.u32 (!%p142_p9), %s609_s16, 5  ;;  %v934_v0 = vld [vmem:[%s1055_s1] sm:$0xff] (!%p142_p9)   ;;  %vm299_vm0 = vcmask (!%p142_p9), 523264   ;;  %v939_v1 = vld [vmem:[%s1055_s1 + $0x8] sm:$0xff] (!%p142_p9)   ;;  %v860_v3 = vmov (!%p142_p9), 0   ;;  %v465_v4 = vld [vmem:[%s1056_s2 + $0x10] sm:$0xff] (!%p142_p9) }
   0xe   : > { %145 = sbr.rel (%p142_p9) target bundleno = 377 (0x179), region = 32  ;;  %p166_p10 = scmp.lt.s32.totalorder (!%p142_p9), %s928_s24, 63  ;;  %v463_v2 = vld [vmem:[%s1056_s2] sm:$0xff] (!%p142_p9)  ;;  %667 = vmatprep.mubr.msk.bf16.mxu0 (!%p142_p9), %vm299_vm0, %v934_v0  ;;  %744 = vset.pattern.permute.xlu0 (!%p142_p9), %v860_v3  ;;  %v464_v5 = vld [vmem:[%s1056_s2 + $0x8] sm:$0xff] (!%p142_p9)  ;;  %v466_v6 = vld [vmem:[%s1056_s2 + $0x18] sm:$0xff] (!%p142_p9) }
   0xf   : > { %669 = vmatprep.mubr.msk.bf16.mxu1 (!%p142_p9), %vm299_vm0, %v939_v1  ;;  %469 = vperm.xlu0 (!%p142_p9), %744, %v463_v2   ;;  %s162_s20 = sand.u32 (!%p142_p9), 1, %s850_s13   ;;  %s1012_s30 = scalar_lea.hbm (!%p142_p9), %s1057_s3, %s928_s24 }
  0x10   : > { %745 = vset.pattern.permute.xlu1 (!%p142_p9), %v860_v3  ;;  %s614_s25 = sshll.u32 (!%p142_p9), %s162_s20, 1  ;;  %s862_s6 = smov (!%p142_p9), [#allocation2]  }
  0x11   : > { %479 = vperm.xlu1 (!%p142_p9), %745, %v465_v4   ;;  %s164_s26 = scalar_lea.vmem (!%p142_p9), [#allocation2], %s614_s25 }
  0x12   : > { %s551_s27 = sshll.u32 (!%p142_p9), %s164_s26, 4  ;;  %s1014_s27 = int_to_ptr.vmem [resolvable:$true] %s551_s27 }
  0x13   : > { %474 = vperm.xlu0 (!%p142_p9), %744, %v464_v5   ;;  %s796_s5 = scalar_lea.vmem (!%p142_p9), %s1014_s27, 32 }
  0x14   : > { %p797_p11 = scmp.ne.s32.totalorder (!%p142_p9), %s1014_s27, %s796_s5 }
  0x15   : > { %s167_s4 = scalar_select %p166_p10, %s928_s24, 63  ;;  %484 = vperm.xlu1 %745, %v466_v6  }
  0x16   : > { %p798_p12 = pnand %p797_p11, %p918_p5 }
  0x17   : > { %s616_s7 = sshll.u32 %s167_s4, 2  ;;  %s537_s4 = scalar_lea.sflag [#allocation3], %s162_s20 }
  0x18   : > { %s958_s16 = scalar_lea.vmem %s1054_s0, %s616_s7  ;;  %p799_p13 = pneg %p798_p12 }
  0x19   : > { %v746_v7 = vld [vmem:[%s958_s16 + $0x40] sm:$0xff]   ;;  %v748_v9 = vld [vmem:[%s958_s16 + $0x48] sm:$0xff]   ;;  %v750_v13 = vld [vmem:[%s958_s16 + $0x50] sm:$0xff]   ;;  %s800_s7 = sshll.u32 %s862_s6, 4  ;;  %s801_s7 = int_to_ptr.vmem [resolvable:$false] %s800_s7 }
  0x1a   : > { %v747_v8 = vld [vmem:[%s958_s16] sm:$0xff]   ;;  %687 = vmatprep.subr.msk.bf16.mxu0 %vm299_vm0, %v746_v7  ;;  %688 = vmatprep.subr.msk.bf16.mxu1 %vm299_vm0, %v746_v7  ;;  %v749_v11 = vld [vmem:[%s958_s16 + $0x8] sm:$0xff]   ;;  %v751_v14 = vld [vmem:[%s958_s16 + $0x10] sm:$0xff]   ;;  %s802_s8 = scalar_lea.vmem %s801_s7, 64  ;;  %p803_p0 = scmp.lt.s32.totalorder %s1014_s27, %s801_s7 }
  0x1b   : > { %v307_v10 = vsel %vm299_vm0, %v747_v8, 0  ;;  %v310_v12 = vsel %vm299_vm0, %v749_v11, 0  ;;  %v313_v15 = vsel %vm299_vm0, %v751_v14, 0  ;;  %v752_v16 = vld [vmem:[%s958_s16 + $0x58] sm:$0xff]   ;;  %v754_v19 = vld [vmem:[%s958_s16 + $0x60] sm:$0xff]   ;;  %v756_v22 = vld [vmem:[%s958_s16 + $0x68] sm:$0xff]   ;;  %p804_p1 = scmp.lt.s32.totalorder %s802_s8, %s796_s5 }
  0x1c   : > { %652 = vmatpush3.bf16.xpose.msra.mxu0 %v307_v10  ;;  %679 = vmatpush3.bf16.xpose.msra.mxu1 %v307_v10  ;;  %v753_v17 = vld [vmem:[%s958_s16 + $0x18] sm:$0xff]   ;;  %v755_v20 = vld [vmem:[%s958_s16 + $0x20] sm:$0xff]   ;;  %v757_v23 = vld [vmem:[%s958_s16 + $0x28] sm:$0xff]  }
  0x1d   : > { %689 = vmatprep.subr.msk.bf16.mxu0 %vm299_vm0, %v748_v9  ;;  %690 = vmatprep.subr.msk.bf16.mxu1 %vm299_vm0, %v748_v9  ;;  %v316_v18 = vsel %vm299_vm0, %v753_v17, 0  ;;  %v319_v21 = vsel %vm299_vm0, %v755_v20, 0  ;;  %v322_v24 = vsel %vm299_vm0, %v757_v23, 0  ;;  %v758_v25 = vld [vmem:[%s958_s16 + $0x70] sm:$0xff]   ;;  %v760_v28 = vld [vmem:[%s958_s16 + $0x78] sm:$0xff]   ;;  %p805_p2 = por %p804_p1, %p803_p0 }
  0x1e   : > { %v759_v26 = vld [vmem:[%s958_s16 + $0x30] sm:$0xff]   ;;  %v761_v29 = vld [vmem:[%s958_s16 + $0x38] sm:$0xff]  }
  0x1f   : > { %v325_v27 = vsel %vm299_vm0, %v759_v26, 0  ;;  %v328_v30 = vsel %vm299_vm0, %v761_v29, 0  ;;  %p806_p3 = pnand %p805_p2, %p799_p13 }
  0x24   : > { %654 = vmatpush3.bf16.xpose.msra.mxu0 %v310_v12  ;;  %680 = vmatpush3.bf16.xpose.msra.mxu1 %v310_v12 }
  0x25   : > { %691 = vmatprep.subr.msk.bf16.mxu0 %vm299_vm0, %v750_v13  ;;  %692 = vmatprep.subr.msk.bf16.mxu1 %vm299_vm0, %v750_v13 }
  0x2c   : > { %656 = vmatpush3.bf16.xpose.msra.mxu0 %v313_v15  ;;  %681 = vmatpush3.bf16.xpose.msra.mxu1 %v313_v15 }
  0x2d   : > { %693 = vmatprep.subr.msk.bf16.mxu0 %vm299_vm0, %v752_v16  ;;  %694 = vmatprep.subr.msk.bf16.mxu1 %vm299_vm0, %v752_v16 }
  0x34   : > { %658 = vmatpush3.bf16.xpose.msra.mxu0 %v316_v18  ;;  %682 = vmatpush3.bf16.xpose.msra.mxu1 %v316_v18 }
  0x35   : > { %695 = vmatprep.subr.msk.bf16.mxu0 %vm299_vm0, %v754_v19  ;;  %696 = vmatprep.subr.msk.bf16.mxu1 %vm299_vm0, %v754_v19 }
  0x3c   : > { %660 = vmatpush3.bf16.xpose.msra.mxu0 %v319_v21  ;;  %683 = vmatpush3.bf16.xpose.msra.mxu1 %v319_v21 }
  0x3d   : > { %697 = vmatprep.subr.msk.bf16.mxu0 %vm299_vm0, %v756_v22  ;;  %698 = vmatprep.subr.msk.bf16.mxu1 %vm299_vm0, %v756_v22 }
  0x44   : > { %662 = vmatpush3.bf16.xpose.msra.mxu0 %v322_v24  ;;  %684 = vmatpush3.bf16.xpose.msra.mxu1 %v322_v24 }
  0x45   : > { %699 = vmatprep.subr.msk.bf16.mxu0 %vm299_vm0, %v758_v25  ;;  %700 = vmatprep.subr.msk.bf16.mxu1 %vm299_vm0, %v758_v25 }
  0x4c   : > { %664 = vmatpush3.bf16.xpose.msra.mxu0 %v325_v27  ;;  %685 = vmatpush3.bf16.xpose.msra.mxu1 %v325_v27 }
  0x4d   : > { %701 = vmatprep.subr.msk.bf16.mxu0 %vm299_vm0, %v760_v28  ;;  %702 = vmatprep.subr.msk.bf16.mxu1 %vm299_vm0, %v760_v28 }
  0x54   : > { %666 = vmatpush3.bf16.xpose.msra.mxu0 %v328_v30  ;;  %686 = vmatpush3.bf16.xpose.msra.mxu1 %v328_v30 }
  0x5b   : > { %668 = vmatmul.mubr.msk.bf16.vlgmr.msra.gmra.mrb[0].mxu0 %vm299_vm0, %v934_v0  ;;  %670 = vmatmul.mubr.msk.bf16.vlgmr.msra.gmra.mrb[0].mxu1 %vm299_vm0, %v939_v1 }
  0x8e   : > { %v470_v0 = vpop.permute.xlu0 %469 }
  0x90   : > { %v480_v4 = vpop.permute.xlu1 %479 }
  0x92   : > { %v475_v13 = vpop.permute.xlu0 %474 }
  0x94   : > { %v485_v20 = vpop.permute.xlu1 %484 }
 0x12e   : > { %v388_v31 = vpop.f32.mrb[0].mxu0  ;;  %v398_v32 = vpop.f32.mrb[0].mxu1 }
 0x12f   : > { %v637_v33 = vmul.f32 -1.442695, %v388_v31  ;;  %v641_v34 = vmul.f32 -1.442695, %v398_v32  ;;  %v390_v35 = vpop.f32.mrb[1].mxu0  ;;  %v400_v36 = vpop.f32.mrb[1].mxu1 }
 0x130   : > { %v638_v37 = vmul.f32 -1.442695, %v390_v35  ;;  %v642_v38 = vmul.f32 -1.442695, %v400_v36  ;;  %v392_v39 = vpop.f32.mrb[2].mxu0  ;;  %v402_v40 = vpop.f32.mrb[2].mxu1 }
 0x131   : > { %764 = vpow2.f32 %v637_v33  ;;  %v639_v41 = vmul.f32 -1.442695, %v392_v39  ;;  %v394_v42 = vpop.f32.mrb[3].mxu0  ;;  %v404_v43 = vpop.f32.mrb[3].mxu1  ;;  %v643_v44 = vmul.f32 -1.442695, %v402_v40 }
 0x132   : > { %766 = vpow2.f32 %v641_v34  ;;  %v640_v45 = vmul.f32 -1.442695, %v394_v42  ;;  %v644_v46 = vmul.f32 -1.442695, %v404_v43 }
 0x133   : > { %768 = vpow2.f32 %v638_v37 }
 0x134   : > { %770 = vpow2.f32 %v642_v38  ;;  %v861_v38 = vmov 1966171168  }
 0x135   : > { %772 = vpow2.f32 %v639_v41 }
 0x136   : > { %774 = vpow2.f32 %v643_v44 }
 0x137   : > { %776 = vpow2.f32 %v640_v45 }
 0x138   : > { %778 = vpow2.f32 %v644_v46 }
 0x13b   : > { %v765_v47 = vpop.eup %764 }
 0x13c   : > { %v767_v48 = vpop.eup %766  ;;  %v431_v49 = vadd.f32 1.0, %v765_v47 }
 0x13d   : > { %v769_v50 = vpop.eup %768  ;;  %v435_v51 = vadd.f32 1.0, %v767_v48 }
 0x13e   : > { %v771_v52 = vpop.eup %770  ;;  %780 = vrcp.f32 %v431_v49  ;;  %v432_v53 = vadd.f32 1.0, %v769_v50 }
 0x13f   : > { %v773_v54 = vpop.eup %772  ;;  %782 = vrcp.f32 %v435_v51  ;;  %v436_v55 = vadd.f32 1.0, %v771_v52 }
 0x140   : > { %v775_v56 = vpop.eup %774  ;;  %784 = vrcp.f32 %v432_v53  ;;  %v433_v57 = vadd.f32 1.0, %v773_v54 }
 0x141   : > { %v777_v58 = vpop.eup %776  ;;  %786 = vrcp.f32 %v436_v55  ;;  %v437_v59 = vadd.f32 1.0, %v775_v56 }
 0x142   : > { %v779_v60 = vpop.eup %778  ;;  %788 = vrcp.f32 %v433_v57  ;;  %v434_v61 = vadd.f32 1.0, %v777_v58 }
 0x143   : > { %790 = vrcp.f32 %v437_v59  ;;  %v438_v62 = vadd.f32 1.0, %v779_v60 }
 0x144   : > { %792 = vrcp.f32 %v434_v61 }
 0x145   : > { %794 = vrcp.f32 %v438_v62 }
 0x148   : > { %v781_v63 = vpop.eup %780 }
 0x149   : > { %v783_v1 = vpop.eup %782  ;;  %v455_v3 = vmul.f32 %v781_v63, %v388_v31 }
 0x14a   : > { %v785_v2 = vpop.eup %784  ;;  %v459_v7 = vmul.f32 %v783_v1, %v398_v32 }
 0x14b   : > { %v787_v5 = vpop.eup %786  ;;  %v456_v9 = vmul.f32 %v785_v2, %v390_v35  ;;  %v487_v12 = vmul.f32 %v470_v0, %v455_v3 }
 0x14c   : > { %v789_v6 = vpop.eup %788  ;;  %v460_v15 = vmul.f32 %v787_v5, %v400_v36  ;;  %v491_v19 = vmul.f32 %v480_v4, %v459_v7 }
 0x14d   : > { %v791_v8 = vpop.eup %790  ;;  %v457_v10 = vmul.f32 %v789_v6, %v392_v39  ;;  %v488_v22 = vmul.f32 %v470_v0, %v456_v9  ;;  %v517_v39 = vunpack.c.l.s4 %v861_v38 }
 0x14e   : > { %v793_v11 = vpop.eup %792  ;;  %v461_v16 = vmul.f32 %v791_v8, %v402_v40  ;;  %v492_v25 = vmul.f32 %v480_v4, %v460_v15  ;;  %v519_v40 = vlaneseq }
 0x14f   : > { %v795_v14 = vpop.eup %794  ;;  %v458_v17 = vmul.f32 %v793_v11, %v394_v42  ;;  %v489_v18 = vmul.f32 %v475_v13, %v457_v10  ;;  %v518_v45 = vunpack.c.0.s8 %v517_v39 }
 0x150   : > { %v462_v21 = vmul.f32 %v795_v14, %v404_v43  ;;  %v493_v27 = vmul.f32 %v485_v20, %v461_v16  ;;  %v520_v46 = vshrl.u32 %v519_v40, 7  ;;  %vm533_vm1 = vcmp.lt.s32.totalorder %v519_v40, 256 }
 0x151   : > { %v490_v23 = vmul.f32 %v475_v13, %v458_v17  ;;  %v495_v24 = vadd.f32 %v489_v18, %v487_v12 }
 0x152   : > { %v494_v29 = vmul.f32 %v485_v20, %v462_v21  ;;  %v521_v50 = vsub.s32 %v518_v45, %v520_v46 }
 0x153   : > { %v504_v26 = vadd.f32 %v490_v23, %v488_v22  ;;  %v496_v28 = vadd.f32 %v495_v24, %v491_v19 }
 0x155   : > { %v497_v30 = vadd.f32 %v496_v28, %v493_v27  ;;  %v505_v31 = vadd.f32 %v504_v26, %v492_v25 }
 0x157   : > { %v498_v32 = vrot.slane %v497_v30, 4  ;;  %v506_v33 = vadd.f32 %v505_v31, %v494_v29 }
 0x159   : > { %v499_v34 = vadd.f32 %v498_v32, %v497_v30  ;;  %v507_v35 = vrot.slane %v506_v33, 4 }
 0x15b   : > { %v500_v36 = vrot.slane %v499_v34, 2  ;;  %v508_v37 = vadd.f32 %v507_v35, %v506_v33 }
 0x15d   : > { %v501_v41 = vadd.f32 %v500_v36, %v499_v34  ;;  %v509_v42 = vrot.slane %v508_v37, 2 }
 0x15f   : > { %v502_v43 = vrot.slane %v501_v41, 1  ;;  %v510_v44 = vadd.f32 %v509_v42, %v508_v37 }
 0x161   : > { %v503_v47 = vadd.f32 %v502_v43, %v501_v41  ;;  %v511_v48 = vrot.slane %v510_v44, 1 }
 0x163   : > { %v512_v49 = vadd.f32 %v511_v48, %v510_v44 }
 0x165   : > { %v515_v51 = vcombine.low %v503_v47, %v512_v49 }
 0x167   : > { %v522_v52 = vrot.slane %v515_v51, %v521_v50 }
 0x169   : > { %v529_v53 = vrot.slane %v522_v52, %v521_v50 }
 0x16b   : > { %535 = vst.msk [vmem:[%s164_s26] sm:$0x3] %vm533_vm1, %v529_v53 }
 0x16c   : > { %809 = shalt.err (!%p806_p3)
}
 0x16d   : > { %s810_s24 = scalar_lea.hbm %s1012_s30, 32  ;;  %s814_s11 = scalar_lea.hbm %s1057_s3, 64 }
 0x16e   : > { %p811_p4 = scmp.ne.s32.totalorder %s1012_s30, %s810_s24  ;;  %p815_p9 = scmp.lt.u32.totalorder %s1012_s30, %s1057_s3 }
 0x16f   : > { %p816_p10 = scmp.lt.u32.totalorder %s814_s11, %s810_s24  ;;  %p818_p12 = scmp.lt.u32.totalorder %s810_s24, %s1012_s30 }
 0x170   : > { %p812_p7 = pnand %p811_p4, %p918_p5 }
 0x171   : > { %p817_p11 = por %p816_p10, %p815_p9 }
 0x172   : > { %p813_p8 = pneg %p812_p7 }
 0x173   : > { %p819_p13 = por %p818_p12, %p817_p11 }
 0x175   : > { %p820_p0 = pnand %p819_p13, %p813_p8 }
 0x177   : > { %823 = shalt.err (!%p820_p0)
}
 0x178   : > { %703 = dma.vmem_to_hbm [thread:$0]  (%p918_p5), %s1014_s27, 32, %s1012_s30, %s537_s4  }
 0x179 PF: > { %p709_p1 = scmp.ge.s32.totalorder %s858_s15, 2  ;;  %s563_s19 = sand.u32 1, %s846_s12  }
 0x17a   : > { %s564_s20 = scalar_lea.sflag [#allocation3], %s563_s19 }
 0x17b   : > { %p706_p2 = pnand %p709_p1, %p922_p6 }
 0x17d   : > { %841 = dma.done.wait (!%p706_p2), %s564_s20, 32  }
 0x17e   : > { %843 = vsyncadd (!%p706_p2), %s564_s20, 4294967264  ;;  %p13_p3 = scmp.ge.s32.totalorder %s906_s18, 4   ;;  %s1060_s12 = smov %s850_s13 }
 0x17f   : > { %s1061_s13 = smov %s854_s14  ;;  %s1062_s14 = smov %s916_s21 }
 0x180   : > { %s1063_s15 = smov %s906_s18  ;;  %15 = sbr.rel (!%p13_p3) target bundleno = 3 (0x3), region = 67 }
 0x187   :  { %569 = vsyncpa [#allocation3], 1 }
 0x188   :  { %571 = vsyncpa [#allocation3 + $0x1], 1 }

</bundles_post_ra>
